<compile_context>
chip_gen: v6e
topology: v6e:2x2x1
jax: 0.10.0
libtpu: 0.0.40
codegen_flags: <defaults>
</compile_context>

<pallas_src>
import jax
import jax.numpy as jnp
from jax.experimental import pallas as pl
from jax.experimental.pallas import tpu as pltpu

_MiB = 1024 * 1024
_LANE = 128


def _make_kernel(elem_f32):
    def kernel(w_ref, shift_ref, lat_ref, x_ref, o_ref):
        # 1x1 conv == (C_out, C_in) @ (C_in, thw) matmul on the MXU, f32 accum.
        side = jnp.dot(w_ref[...], lat_ref[0],
                       preferred_element_type=jnp.float32)
        # folded conv-bias + eval-mode task norm, then relu1 (orig_relus=False)
        side = jnp.maximum(side + shift_ref[...], 0.0)
        if elem_f32:
            y = x_ref[0].astype(jnp.float32) + side
        else:
            # bf16 elementwise tail (v6e/v7x VALUs are bf16-native)
            y = x_ref[0] + side.astype(x_ref.dtype)
        o_ref[0] = jnp.maximum(y, 0.0).astype(o_ref.dtype)
    return kernel


def _vmem_capacity_bytes():
    try:
        return int(pltpu.get_tpu_info().vmem_capacity_bytes)
    except Exception:
        return 64 * _MiB  # conservative (v7x-class) fallback


def _is_v5e():
    try:
        kind = jax.devices()[0].device_kind.lower()
        return ("v5 lite" in kind) or ("v5e" in kind) or ("v5litepod" in kind)
    except Exception:
        return False


def side_and_comb_shared(x_nchw, lateral_nchw, w, b, gamma, beta,
                         running_mean, running_var, task_id=0, eps=1e-5,
                         alias_x_to_out=False):
    """Fused SideAndCombShared forward (NCHW in / NCHW out).

    x_nchw:       (N, C_out, H, W)
    lateral_nchw: (N, C_in,  H, W)
    w:            (C_out, C_in, 1, 1)   PyTorch conv weight layout
    b:            (C_out,)
    gamma/beta:   (ntasks, C_out)       task-conditioned norm affine params
    running_*:    (C_out,)              eval-mode running stats
    alias_x_to_out: set True if x is dead after this op (donates x's buffer).

    For best performance feed bf16 x/lateral; the kernel is HBM-bound and
    bf16 halves the traffic (MXU still accumulates in f32).
    """
    N, C_out, H, W = x_nchw.shape
    C_in = lateral_nchw.shape[1]
    HW = H * W

    # Free reshapes (no HBM transpose): channels on sublanes, spatial on lanes.
    x3 = x_nchw.reshape(N, C_out, HW)
    lat3 = lateral_nchw.reshape(N, C_in, HW)

    # ---- fold conv bias + eval-mode task-conditioned norm (plain JAX) ------
    # TODO(synk): training-mode batch-stat updates of the norm are not modeled;
    # eval-mode running statistics are folded into scale/shift.
    g = gamma[task_id].astype(jnp.float32)
    bt = beta[task_id].astype(jnp.float32)
    inv_std = jax.lax.rsqrt(running_var.astype(jnp.float32) + eps)
    scale = g * inv_std                                            # (C_out,)
    w_mat = w.reshape(C_out, C_in).astype(jnp.float32)
    w_fold = (w_mat * scale[:, None]).astype(lateral_nchw.dtype)   # (C_out, C_in)
    shift = (b.astype(jnp.float32) * scale + bt
             - running_mean.astype(jnp.float32) * scale).reshape(C_out, 1)

    # ---- generation-aware VMEM budgets --------------------------------------
    vmem_cap = _vmem_capacity_bytes()
    if vmem_cap >= 96 * _MiB:          # 128 MiB parts (v5e / v6e)
        stream_budget = 96 * _MiB
        vmem_limit_cap = 112 * _MiB
    else:                              # 64 MiB parts (v7x): leave ~25% headroom
        stream_budget = 40 * _MiB
        vmem_limit_cap = 48 * _MiB

    x_isz = jnp.dtype(x_nchw.dtype).itemsize
    lat_isz = jnp.dtype(lateral_nchw.dtype).itemsize
    # double-buffered streaming bytes per lane column per grid step
    per_lane = 2 * (C_in * lat_isz + 2 * C_out * x_isz)

    # ---- spatial (lane) tile: as large as the budget allows ------------------
    if HW <= _LANE:
        thw = HW                                      # full-extent block
    elif HW * per_lane <= stream_budget:
        thw = HW                                      # whole image in one tile
    else:
        thw = max(_LANE, min(stream_budget // per_lane, HW) // _LANE * _LANE)

    # megacore balance (v7x has 2 TCs): keep >=2 total grid steps when possible
    while N * pl.cdiv(HW, thw) < 2 and thw > _LANE:
        new_thw = max(_LANE, (thw // 2) // _LANE * _LANE)
        if new_thw == thw:
            break
        thw = new_thw

    grid = (N, pl.cdiv(HW, thw))

    need = per_lane * thw + (C_out * C_in + C_out) * 4
    vmem_limit = int(min(vmem_limit_cap, max(32 * _MiB, need + 8 * _MiB)))

    # elementwise tail dtype: bf16 on bf16-native VALUs (v6e/v7x), else f32
    elem_f32 = (x_nchw.dtype != jnp.bfloat16) or _is_v5e()

    io_alias = {3: 0} if alias_x_to_out else {}

    out3 = pl.pallas_call(
        _make_kernel(elem_f32),
        out_shape=jax.ShapeDtypeStruct((N, C_out, HW), x_nchw.dtype),
        grid_spec=pltpu.PrefetchScalarGridSpec(
            num_scalar_prefetch=0,
            grid=grid,
            in_specs=[
                pl.BlockSpec((C_out, C_in), lambda n, j: (0, 0)),      # folded W
                pl.BlockSpec((C_out, 1), lambda n, j: (0, 0)),         # folded shift
                pl.BlockSpec((1, C_in, thw), lambda n, j: (n, 0, j)),  # lateral tile
                pl.BlockSpec((1, C_out, thw), lambda n, j: (n, 0, j)), # x tile
            ],
            out_specs=pl.BlockSpec((1, C_out, thw), lambda n, j: (n, 0, j)),
        ),
        compiler_params=pltpu.CompilerParams(
            dimension_semantics=("parallel", "parallel"),
            vmem_limit_bytes=vmem_limit),
        input_output_aliases=io_alias,
    )(w_fold, shift, lat3, x3)

    return out3.reshape(N, C_out, H, W)


def _reference(x, lateral, w, b, gamma, beta, mean, var, task_id=0, eps=1e-5):
    # pure-JAX NCHW reference matching the PyTorch forward (f32)
    side = jax.lax.conv_general_dilated(
        lateral.astype(jnp.float32), w.astype(jnp.float32),
        window_strides=(1, 1), padding="VALID",
        dimension_numbers=("NCHW", "OIHW", "NCHW"))
    side = side + b.reshape(1, -1, 1, 1)
    g = gamma[task_id].reshape(1, -1, 1, 1)
    bt = beta[task_id].reshape(1, -1, 1, 1)
    side = (side - mean.reshape(1, -1, 1, 1)) * jax.lax.rsqrt(
        var.reshape(1, -1, 1, 1) + eps) * g + bt
    side = jnp.maximum(side, 0.0)                          # relu1 (orig_relus=False)
    return jnp.maximum(x.astype(jnp.float32) + side, 0.0)  # relu2


if __name__ == "__main__":
    key = jax.random.PRNGKey(0)
    kx, kl, kw, kb, kg, kbe, km, kv = jax.random.split(key, 8)

    N, C_in, C_out, H, W = 2, 16, 32, 16, 16
    ntasks = 4

    x = jax.random.normal(kx, (N, C_out, H, W), dtype=jnp.float32)
    lateral = jax.random.normal(kl, (N, C_in, H, W), dtype=jnp.float32)

    # synthetic parameters (shared.side is a 1x1 conv C_in -> C_out)
    w = jax.random.normal(kw, (C_out, C_in, 1, 1), dtype=jnp.float32) * 0.1
    b = jax.random.normal(kb, (C_out,), dtype=jnp.float32) * 0.1
    gamma = 1.0 + 0.1 * jax.random.normal(kg, (ntasks, C_out), dtype=jnp.float32)
    beta = 0.1 * jax.random.normal(kbe, (ntasks, C_out), dtype=jnp.float32)
    running_mean = 0.1 * jax.random.normal(km, (C_out,), dtype=jnp.float32)
    running_var = jnp.abs(1.0 + 0.1 * jax.random.normal(kv, (C_out,),
                                                        dtype=jnp.float32))

    # 1) main f32 case: HW = 256 (lane-dense, grid = (2, 1) -> 2 steps)
    out = jax.block_until_ready(side_and_comb_shared(
        x, lateral, w, b, gamma, beta, running_mean, running_var, task_id=1))
    ref = _reference(x, lateral, w, b, gamma, beta, running_mean, running_var,
                     task_id=1)
    assert out.shape == (N, C_out, H, W)
    assert jnp.allclose(out, ref, atol=1e-4, rtol=1e-4), "mismatch vs reference"

    # 2) small-spatial case: HW = 81 < 128 lanes -> full-extent block path
    H2 = W2 = 9
    x2 = jax.random.normal(kx, (N, C_out, H2, W2), dtype=jnp.float32)
    lat2 = jax.random.normal(kl, (N, C_in, H2, W2), dtype=jnp.float32)
    out2 = jax.block_until_ready(side_and_comb_shared(
        x2, lat2, w, b, gamma, beta, running_mean, running_var, task_id=0))
    ref2 = _reference(x2, lat2, w, b, gamma, beta, running_mean, running_var,
                      task_id=0)
    assert jnp.allclose(out2, ref2, atol=1e-4, rtol=1e-4), \
        "mismatch vs reference (small HW)"

    # 3) megacore-balance path: N = 1 forces thw split so grid has >=2 steps
    out3 = jax.block_until_ready(side_and_comb_shared(
        x[:1], lateral[:1], w, b, gamma, beta, running_mean, running_var,
        task_id=2))
    ref3 = _reference(x[:1], lateral[:1], w, b, gamma, beta, running_mean,
                      running_var, task_id=2)
    assert jnp.allclose(out3, ref3, atol=1e-4, rtol=1e-4), \
        "mismatch vs reference (N=1 megacore split)"

    # 4) bf16 I/O case (halves HBM traffic; looser tolerance vs f32 reference)
    xb = x.astype(jnp.bfloat16)
    latb = lateral.astype(jnp.bfloat16)
    outb = jax.block_until_ready(side_and_comb_shared(
        xb, latb, w, b, gamma, beta, running_mean, running_var, task_id=1))
    refb = _reference(xb, latb, w, b, gamma, beta, running_mean, running_var,
                      task_id=1)
    assert outb.dtype == jnp.bfloat16
    assert jnp.allclose(outb.astype(jnp.float32), refb, atol=1e-1, rtol=1e-1), \
        "mismatch vs reference (bf16)"

    print("KERNEL_OK")
</pallas_src>

<mosaic_0001>
module attributes {stable_mosaic.version = 11 : i64} {
  func.func @kernel(%arg0: i32, %arg1: i32, %arg2: memref<32x16xf32, #tpu.memory_space<vmem>>, %arg3: memref<32x1xf32, #tpu.memory_space<vmem>>, %arg4: memref<1x16x256xf32, #tpu.memory_space<vmem>>, %arg5: memref<1x32x256xf32, #tpu.memory_space<vmem>>, %arg6: memref<1x32x256xf32, #tpu.memory_space<vmem>>) attributes {dimension_semantics = [#tpu.dimension_semantics<parallel>, #tpu.dimension_semantics<parallel>], iteration_bounds = array<i64: 2, 1>, scalar_prefetch = 0 : i64, scratch_operands = 0 : i64, tpu.core_type = #tpu.core_type<tc>, window_params = [{pipeline_mode = #tpu.pipeline_mode<synchronous>, transform_indices = @transform_0, window_bounds = array<i64: 32, 16>}, {pipeline_mode = #tpu.pipeline_mode<synchronous>, transform_indices = @transform_1, window_bounds = array<i64: 32, 1>}, {transform_indices = @transform_2, window_bounds = array<i64: 1, 16, 256>}, {transform_indices = @transform_3, window_bounds = array<i64: 1, 32, 256>}, {transform_indices = @transform_4, window_bounds = array<i64: 1, 32, 256>}]} {
    %c0 = arith.constant 0 : index
    %c0_0 = arith.constant 0 : index
    %0 = vector.load %arg2[%c0, %c0_0] : memref<32x16xf32, #tpu.memory_space<vmem>>, vector<32x16xf32>
    %c0_1 = arith.constant 0 : index
    %c0_2 = arith.constant 0 : index
    %c0_3 = arith.constant 0 : index
    %1 = vector.load %arg4[%c0_1, %c0_2, %c0_3] : memref<1x16x256xf32, #tpu.memory_space<vmem>>, vector<1x16x256xf32>
    %2 = vector.shape_cast %1 : vector<1x16x256xf32> to vector<16x256xf32>
    %cst = arith.constant dense<0.000000e+00> : vector<32x256xf32>
    %3 = tpu.matmul %0, %2, %cst {dimension_numbers = #tpu.dot_dimension_numbers<[1], [0], [0], [1], [0, 0, 1, 1], [], []>} : vector<32x16xf32>, vector<16x256xf32>, vector<32x256xf32> -> vector<32x256xf32>
    %c0_4 = arith.constant 0 : index
    %c0_5 = arith.constant 0 : index
    %4 = vector.load %arg3[%c0_4, %c0_5] : memref<32x1xf32, #tpu.memory_space<vmem>>, vector<32x1xf32>
    %5 = vector.broadcast %4 : vector<32x1xf32> to vector<32x256xf32>
    %6 = arith.addf %3, %5 : vector<32x256xf32>
    %cst_6 = arith.constant 0.000000e+00 : f32
    %7 = vector.broadcast %cst_6 : f32 to vector<32x256xf32>
    %8 = arith.maximumf %6, %7 : vector<32x256xf32>
    %c0_7 = arith.constant 0 : index
    %c0_8 = arith.constant 0 : index
    %c0_9 = arith.constant 0 : index
    %9 = vector.load %arg5[%c0_7, %c0_8, %c0_9] : memref<1x32x256xf32, #tpu.memory_space<vmem>>, vector<1x32x256xf32>
    %10 = vector.shape_cast %9 : vector<1x32x256xf32> to vector<32x256xf32>
    %11 = arith.addf %10, %8 : vector<32x256xf32>
    %cst_10 = arith.constant 0.000000e+00 : f32
    %12 = vector.broadcast %cst_10 : f32 to vector<32x256xf32>
    %13 = arith.maximumf %11, %12 : vector<32x256xf32>
    %c0_11 = arith.constant 0 : index
    %c0_12 = arith.constant 0 : index
    %c0_13 = arith.constant 0 : index
    %14 = vector.load %arg6[%c0_11, %c0_12, %c0_13] : memref<1x32x256xf32, #tpu.memory_space<vmem>>, vector<1x32x256xf32>
    %15 = vector.shape_cast %14 : vector<1x32x256xf32> to vector<32x256xf32>
    %16 = vector.shape_cast %13 : vector<32x256xf32> to vector<1x32x256xf32>
    tpu.vector_store %arg6[%c0_11, %c0_12, %c0_13], %16 {strides = array<i32>} : memref<1x32x256xf32, #tpu.memory_space<vmem>>, vector<1x32x256xf32>,
    return
  }
  func.func @transform_0(%arg0: i32, %arg1: i32) -> (i32, i32) {
    %c0_i32 = arith.constant 0 : i32
    %c0_i32_0 = arith.constant 0 : i32
    %c0_i32_1 = arith.constant 0 : i32
    return %c0_i32, %c0_i32_0 : i32, i32
  }
  func.func @transform_1(%arg0: i32, %arg1: i32) -> (i32, i32) {
    %c0_i32 = arith.constant 0 : i32
    %c0_i32_0 = arith.constant 0 : i32
    %c0_i32_1 = arith.constant 0 : i32
    return %c0_i32, %c0_i32_0 : i32, i32
  }
  func.func @transform_2(%arg0: i32, %arg1: i32) -> (i32, i32, i32) {
    %c0_i32 = arith.constant 0 : i32
    %c0_i32_0 = arith.constant 0 : i32
    return %arg0, %c0_i32, %arg1 : i32, i32, i32
  }
  func.func @transform_3(%arg0: i32, %arg1: i32) -> (i32, i32, i32) {
    %c0_i32 = arith.constant 0 : i32
    %c0_i32_0 = arith.constant 0 : i32
    return %arg0, %c0_i32, %arg1 : i32, i32, i32
  }
  func.func @transform_4(%arg0: i32, %arg1: i32) -> (i32, i32, i32) {
    %c0_i32 = arith.constant 0 : i32
    %c0_i32_0 = arith.constant 0 : i32
    return %arg0, %c0_i32, %arg1 : i32, i32, i32
  }
}

</mosaic_0001>

<bundles_post_ra>
// kernel: tpu_custom_call.1
= control target key start
LH: loop header
LB: loop body
LE: loop exit
PB: predicated region body
PF: predicated region fallthrough
CT: control target
= control target key end

     0   :  { %9 = vsyncpa [#allocation3], 0  ;;  %s1001_s0 = inlined_call_operand.vmem [shape: f32[32,16], index: 0, kind: input, shape index: {}]   ;;  %s1002_s1 = inlined_call_operand.vmem [shape: f32[32,1], index: 1, kind: input, shape index: {}]   ;;  %s1003_s2 = inlined_call_operand.vmem [shape: f32[2,16,256], index: 2, kind: input, shape index: {}]   ;;  %s1004_s3 = inlined_call_operand.hbm [shape: f32[2,32,256], index: 3, kind: input, shape index: {}]   ;;  %s1005_s4 = inlined_call_operand.hbm [shape: f32[2,32,256], index: 4, kind: output, shape index: {}]  }
   0x1   :  { %11 = vsyncpa [#allocation3 + $0x1], 0 }
   0x2   :  { %12 = vsyncpa [#allocation4], 0 }
   0x3   :  { %14 = vsyncpa [#allocation4 + $0x1], 0  ;;  %s808_s15 = smov 0   ;;  %s810_s16 = smov 0  }
   0x4   :  { %s812_s17 = smov 0   ;;  %s814_s18 = smov 0  }
   0x5   :  { %s816_s19 = smov 0   ;;  %s818_s20 = smov 0  }
   0x6 LB: > { %s567_s21 = sadd.s32 4294967295, %s773_s20   ;;  %s568_s22 = sadd.s32 4294967294, %s773_s20   ;;  %s773_s20 = sphi %s818_s20, %s20_s20   ;;  %s769_s19 = sphi %s816_s19, %s1016_s19   ;;  %s765_s18 = sphi %s814_s18, %s1015_s18   ;;  %s761_s17 = sphi %s812_s17, %s1014_s17   ;;  %s757_s16 = sphi %s810_s16, %s1013_s16   ;;  %s753_s15 = sphi %s808_s15, %s1012_s15  }
   0x7   : > { %s32_s23 = sadd.s32 1, %s769_s19  ;;  %s111_s24 = sadd.s32 1, %s761_s17 }
   0x8   : > { %p34_p0 = scmp.ge.s32.totalorder %s32_s23, 2  ;;  %p118_p1 = scmp.ne.s32.totalorder %s761_s17, %s757_s16 }
   0x9   : > { %p119_p2 = scmp.eq.s32.totalorder %s773_s20, 0  ;;  %p124_p3 = scmp.ne.s32.totalorder %s757_s16, %s753_s15 }
   0xa   : > { %s1018_s23 = smov (%p34_p0, %s32_s23), 0  ;;  %p125_p5 = scmp.eq.s32.totalorder %s567_s21, 0 }
   0xb   : > { %p849_p4 = por %p119_p2, %p118_p1  ;;  %s106_s26 = ssub.s32 %s769_s19, %s1018_s23 }
   0xc   : > { %p150_p6 = scmp.eq.s32.totalorder %s567_s21, 1  ;;  %p109_p7 = scmp.eq.s32.totalorder %s106_s26, 0 }
   0xd   : > { %p855_p8 = por %p125_p5, %p124_p3  ;;  %p156_p10 = scmp.eq.s32.totalorder %s568_s22, 1 }
   0xe   : > { %p859_p9 = por %p150_p6, %p118_p1  ;;  %p607_p13 = scmp.lt.s32.totalorder %s773_s20, 2 }
   0xf   : > { %s864_s29 = scalar_select %p109_p7, %s761_s17, %s111_s24  }
  0x10   : > { %p866_p11 = por %p156_p10, %p124_p3  ;;  %s195_s5 = sand.u32 1, %s761_s17  }
  0x11   : > { %s571_s6 = sshll.u32 %s195_s5, 6  ;;  %s588_s7 = sshll.u32 %s769_s19, 10 }
  0x12   : > { %s207_s10 = scalar_lea.hbm %s1004_s3, %s588_s7  ;;  %s199_s11 = scalar_lea.vmem [#allocation2], %s571_s6 }
  0x13   : > { %s208_s12 = sshll.u32 %s199_s11, 4  ;;  %p879_p0 = pnand %p607_p13, %p849_p4  ;;  %s209_s12 = int_to_ptr.vmem [resolvable:$true] %s208_s12 }
  0x14   : > { %p574_p1 = scmp.ge.s32.totalorder %s773_s20, 1  ;;  %s196_s14 = scalar_lea.sflag [#allocation3], %s195_s5 }
  0x15   : > { %p667_p2 = pneg %p879_p0  ;;  %s678_s21 = scalar_lea.vmem %s209_s12, 1024 }
  0x16   : > { %p679_p3 = scmp.ne.s32.totalorder %s209_s12, %s678_s21  ;;  %s775_s22 = smov [#allocation2]  }
  0x17   : > { %s683_s24 = sshll.u32 %s775_s22, 4  ;;  %s684_s24 = int_to_ptr.vmem [resolvable:$false] %s683_s24 }
  0x18   : > { %p681_p5 = pnand %p679_p3, %p667_p2  ;;  %s685_s26 = scalar_lea.vmem %s684_s24, 2048 }
  0x19   : > { %p686_p7 = scmp.lt.s32.totalorder %s209_s12, %s684_s24  ;;  %p687_p10 = scmp.lt.s32.totalorder %s685_s26, %s678_s21 }
  0x1a   : > { %p682_p6 = pneg %p681_p5 }
  0x1b   : > { %p688_p12 = por %p687_p10, %p686_p7 }
  0x1d   : > { %p689_p4 = pnand %p688_p12, %p682_p6 }
  0x1f   : > { %692 = shalt.err (!%p689_p4)
}
  0x20   : > { %s776_s25 = smov 256   ;;  %s777_s5 = smov 16  }
  0x21   : > { %602 = dma.hbm_to_vmem [thread:$0]  (!%p879_p0), %s207_s10, 1024, %s209_s12, %s196_s14, %s776_s25, %s776_s25, %s777_s5  }
  0x22   : > { %p216_p13 = scmp.lt.s32.totalorder %s773_s20, 3 }
  0x24   : > { %p217_p2 = pnand %p574_p1, %p216_p13 }
  0x25   : > { %s892_s6 = sand.u32 (!%p217_p2), 1, %s757_s16  }
  0x26   : > { %220 = sbr.rel (%p217_p2) target bundleno = 277 (0x115), region = 36  ;;  %s575_s7 = sshll.u32 (!%p217_p2), %s892_s6, 6 }
  0x27   : > { %s223_s8 = scalar_lea.sflag (!%p217_p2), [#allocation3], %s892_s6  ;;  %s898_s9 = scalar_lea.vmem (!%p217_p2), [#allocation2], %s575_s7 }
  0x2b   : > { %744 = dma.done.wait (%p855_p8), %s223_s8, 1024  }
  0x2c   : > { %746 = vsyncadd (%p855_p8), %s223_s8, 4294966272  ;;  %p261_p12 = scmp.lt.s32.totalorder %s765_s18, 1  ;;  %v778_v0 = vmov 0.0   ;;  %v779_v1 = vmov 0   ;;  %v272_v6 = vld [vmem:[%s1001_s0] sm:$0xff]  ;;  %vm304_vm0 = vcmask 130048  }
  0x2d   : > { %381 = vmatprep.mubr.f32.mxu0 %v778_v0  ;;  %393 = vmatprep.mubr.f32.mxu1 %v778_v0  ;;  %v274_v7 = vld [vmem:[%s1001_s0 + $0x10] sm:$0xff]  ;;  %v280_v9 = vld [vmem:[%s1002_s1] sm:$0xff]  ;;  %v273_v10 = vld [vmem:[%s1001_s0 + $0x8] sm:$0xff]  ;;  %s259_s24 = scalar_lea.vmem [#allocation5], %s575_s7  ;;  %s590_s25 = sshll.u32 %s765_s18, 10 }
  0x2e   : > { %s262_s10 = scalar_select %p261_p12, %s765_s18, 1  ;;  %664 = vset.pattern.permute.xlu1 %v779_v1  ;;  %663 = vset.pattern.permute.xlu0 %v779_v1  ;;  %v282_v8 = vld [vmem:[%s1002_s1 + $0x10] sm:$0xff]  ;;  %v275_v11 = vld [vmem:[%s1001_s0 + $0x18] sm:$0xff]  ;;  %v281_v13 = vld [vmem:[%s1002_s1 + $0x8] sm:$0xff] }
  0x2f   : > { %296 = vperm.xlu1 %664, %v282_v8   ;;  %286 = vperm.xlu0 %663, %v280_v9   ;;  %v283_v12 = vld [vmem:[%s1002_s1 + $0x18] sm:$0xff]  ;;  %v414_v20 = vld [vmem:[%s898_s9] sm:$0xff]  ;;  %v415_v28 = vld [vmem:[%s898_s9 + $0x8] sm:$0xff]  ;;  %s462_s26 = sshll.u32 %s259_s24, 4  ;;  %s951_s8 = scalar_lea.hbm %s1005_s4, %s590_s25  ;;  %s953_s26 = int_to_ptr.vmem [resolvable:$true] %s462_s26 }
  0x30   : > { %s589_s11 = sshll.u32 %s262_s10, 5  ;;  %v418_v21 = vld [vmem:[%s898_s9 + $0x20] sm:$0xff]  ;;  %v419_v29 = vld [vmem:[%s898_s9 + $0x28] sm:$0xff]  ;;  %v416_v46 = vld [vmem:[%s898_s9 + $0x10] sm:$0xff]  ;;  %s447_s18 = scalar_lea.sflag [#allocation4], %s892_s6 }
  0x31   : > { %s268_s14 = scalar_lea.vmem %s1003_s2, %s589_s11  ;;  %v420_v47 = vld [vmem:[%s898_s9 + $0x30] sm:$0xff]  ;;  %v417_v54 = vld [vmem:[%s898_s9 + $0x18] sm:$0xff]  ;;  %s780_s10 = smov [#allocation5]  }
  0x32   : > { %v279_v2 = vld [vmem:[%s268_s14 + $0x18] sm:$0xff]  ;;  %v278_v3 = vld [vmem:[%s268_s14 + $0x10] sm:$0xff]  ;;  %v277_v4 = vld [vmem:[%s268_s14 + $0x8] sm:$0xff]  ;;  %s697_s11 = sshll.u32 %s780_s10, 4  ;;  %s698_s11 = int_to_ptr.vmem [resolvable:$false] %s697_s11 }
  0x33   : > { %345 = vmatprep.subr.mxu0 %v279_v2  ;;  %591 = vmatprep.subr.mxu1 %v279_v2  ;;  %v276_v5 = vld [vmem:[%s268_s14] sm:$0xff]  ;;  %v421_v55 = vld [vmem:[%s898_s9 + $0x38] sm:$0xff]  ;;  %s693_s9 = scalar_lea.vmem %s953_s26, 1024  ;;  %s699_s12 = scalar_lea.vmem %s698_s11, 2048 }
  0x34   : > { %346 = vmatpush1.msra.mxu0 %v278_v3  ;;  %593 = vmatpush1.msra.mxu1 %v278_v3  ;;  %p694_p8 = scmp.ne.s32.totalorder %s953_s26, %s693_s9  ;;  %p700_p3 = scmp.lt.s32.totalorder %s953_s26, %s698_s11 }
  0x35   : > { %347 = vmatprep.subr.mxu0 %v277_v4  ;;  %592 = vmatprep.subr.mxu1 %v277_v4  ;;  %p701_p5 = scmp.lt.s32.totalorder %s699_s12, %s693_s9 }
  0x36   : > { %348 = vmatpush1.msra.mxu0 %v276_v5  ;;  %594 = vmatpush1.msra.mxu1 %v276_v5  ;;  %p695_p0 = pnand %p694_p8, %p859_p9 }
  0x37   : > { %579 = vmatmul.mubr.msk.f32.vlgmr.msra.gmra.mxu0 %vm304_vm0, %v272_v6  ;;  %581 = vmatmul.mubr.msk.f32.vlgmr.msra.gmra.mxu1 %vm304_vm0, %v274_v7  ;;  %p702_p6 = por %p701_p5, %p700_p3 }
  0x38   : > { %387 = vmatprep.mubr.f32.mxu0 %v778_v0  ;;  %399 = vmatprep.mubr.f32.mxu1 %v778_v0  ;;  %p696_p1 = pneg %p695_p0 }
  0x39   : > { %301 = vperm.xlu1 %664, %v283_v12   ;;  %291 = vperm.xlu0 %663, %v281_v13  }
  0x3a   : > { %p703_p7 = pnand %p702_p6, %p696_p1 }
  0x3b   : > { %580 = vmatmul.mubr.msk.f32.gmra.mxu0 %vm304_vm0, %v273_v10  ;;  %582 = vmatmul.mubr.msk.f32.gmra.mxu1 %vm304_vm0, %v275_v11 }
  0xaa   : > { %v297_v14 = vpop.permute.xlu1 %296  ;;  %v287_v15 = vpop.permute.xlu0 %286 }
  0xb4   : > { %v302_v34 = vpop.permute.xlu1 %301  ;;  %v292_v35 = vpop.permute.xlu0 %291 }
  0xf7   : > { %v383_v16 = vpop.f32.mrf.mxu0  ;;  %v395_v17 = vpop.f32.mrf.mxu1 }
  0xf8   : > { %v384_v18 = vadd.f32 %v383_v16, %v287_v15  ;;  %v396_v19 = vadd.f32 %v395_v17, %v297_v14 }
  0xf9   : > { %v385_v22 = vpop.f32.mrf.mxu0  ;;  %v397_v23 = vpop.f32.mrf.mxu1 }
  0xfa   : > { %v406_v24 = vmax.f32 %v384_v18, 0.0  ;;  %v410_v25 = vmax.f32 %v396_v19, 0.0  ;;  %v386_v26 = vadd.f32 %v385_v22, %v287_v15  ;;  %v398_v27 = vadd.f32 %v397_v23, %v297_v14 }
  0xfb   : > { %v389_v30 = vpop.f32.mrf.mxu0  ;;  %v401_v31 = vpop.f32.mrf.mxu1 }
  0xfc   : > { %v422_v32 = vadd.f32 %v414_v20, %v406_v24  ;;  %v426_v33 = vadd.f32 %v418_v21, %v410_v25  ;;  %v407_v36 = vmax.f32 %v386_v26, 0.0  ;;  %v411_v37 = vmax.f32 %v398_v27, 0.0 }
  0xfd   : > { %v390_v38 = vadd.f32 %v389_v30, %v292_v35  ;;  %v402_v39 = vadd.f32 %v401_v31, %v302_v34  ;;  %v391_v40 = vpop.f32.mrf.mxu0  ;;  %v403_v41 = vpop.f32.mrf.mxu1 }
  0xfe   : > { %v430_v42 = vmax.f32 %v422_v32, 0.0  ;;  %v434_v43 = vmax.f32 %v426_v33, 0.0  ;;  %v423_v44 = vadd.f32 %v415_v28, %v407_v36  ;;  %v427_v45 = vadd.f32 %v419_v29, %v411_v37 }
  0xff   : > { %v408_v48 = vmax.f32 %v390_v38, 0.0  ;;  %v412_v49 = vmax.f32 %v402_v39, 0.0  ;;  %v392_v50 = vadd.f32 %v391_v40, %v292_v35  ;;  %v404_v51 = vadd.f32 %v403_v41, %v302_v34 }
 0x100   : > { %438 = vst [vmem:[%s259_s24] sm:$0xff] %v430_v42  ;;  %442 = vst [vmem:[%s259_s24 + $0x20] sm:$0xff] %v434_v43  ;;  %v431_v52 = vmax.f32 %v423_v44, 0.0  ;;  %v435_v53 = vmax.f32 %v427_v45, 0.0 }
 0x101   : > { %v424_v56 = vadd.f32 %v416_v46, %v408_v48  ;;  %v428_v57 = vadd.f32 %v420_v47, %v412_v49  ;;  %v409_v58 = vmax.f32 %v392_v50, 0.0  ;;  %v413_v59 = vmax.f32 %v404_v51, 0.0 }
 0x102   : > { %439 = vst [vmem:[%s259_s24 + $0x8] sm:$0xff] %v431_v52  ;;  %443 = vst [vmem:[%s259_s24 + $0x28] sm:$0xff] %v435_v53 }
 0x103   : > { %v432_v60 = vmax.f32 %v424_v56, 0.0  ;;  %v436_v61 = vmax.f32 %v428_v57, 0.0  ;;  %v425_v62 = vadd.f32 %v417_v54, %v409_v58  ;;  %v429_v63 = vadd.f32 %v421_v55, %v413_v59 }
 0x105   : > { %440 = vst [vmem:[%s259_s24 + $0x10] sm:$0xff] %v432_v60  ;;  %444 = vst [vmem:[%s259_s24 + $0x30] sm:$0xff] %v436_v61  ;;  %v433_v0 = vmax.f32 %v425_v62, 0.0  ;;  %v437_v1 = vmax.f32 %v429_v63, 0.0 }
 0x107   : > { %441 = vst [vmem:[%s259_s24 + $0x18] sm:$0xff] %v433_v0  ;;  %445 = vst [vmem:[%s259_s24 + $0x38] sm:$0xff] %v437_v1 }
 0x108   : > { %706 = shalt.err (!%p703_p7)
}
 0x109   : > { %s707_s13 = scalar_lea.hbm %s951_s8, 1024  ;;  %s711_s21 = scalar_lea.hbm %s1005_s4, 2048 }
 0x10a   : > { %p708_p10 = scmp.ne.s32.totalorder %s951_s8, %s707_s13  ;;  %p712_p2 = scmp.lt.s32.totalorder %s951_s8, %s1005_s4 }
 0x10b   : > { %p713_p12 = scmp.lt.s32.totalorder %s711_s21, %s707_s13 }
 0x10c   : > { %p709_p4 = pnand %p708_p10, %p859_p9 }
 0x10d   : > { %p714_p8 = por %p713_p12, %p712_p2 }
 0x10e   : > { %p710_p13 = pneg %p709_p4 }
 0x110   : > { %p715_p0 = pnand %p714_p8, %p710_p13 }
 0x112   : > { %718 = shalt.err (!%p715_p0)
}
 0x113   : > { %s781_s25 = smov 256   ;;  %s782_s7 = smov 16  }
 0x114   : > { %597 = dma.vmem_to_hbm [thread:$0]  (%p859_p9), %s953_s26, 1024, %s951_s8, %s447_s18, %s781_s25, %s781_s25, %s782_s7  }
 0x115 PF: > { %s477_s5 = sand.u32 1, %s753_s15   ;;  %p1011_p1 = scmp.ge.s32.totalorder %s773_s20, 2 }
 0x116   : > { %s478_s9 = scalar_lea.sflag [#allocation4], %s477_s5 }
 0x117   : > { %p604_p3 = pnand %p1011_p1, %p866_p11 }
 0x119   : > { %p605_p5 = pneg %p604_p3 }
 0x11b   : > { %748 = dma.done.wait (%p605_p5), %s478_s9, 1024  }
 0x11c   : > { %750 = vsyncadd (%p605_p5), %s478_s9, 4294966272  ;;  %s20_s20 = sadd.s32 1, %s773_s20   ;;  %s1012_s15 = smov %s757_s16 }
 0x11d   : > { %p17_p6 = scmp.ge.s32.totalorder %s20_s20, 4   ;;  %s1013_s16 = smov %s761_s17 }
 0x11e   : > { %s1014_s17 = smov %s864_s29  ;;  %s1015_s18 = smov %s769_s19 }
 0x11f   : > { %s1016_s19 = smov %s1018_s23  ;;  %19 = sbr.rel (!%p17_p6) target bundleno = 6 (0x6), region = 84 }
 0x124   :  { %483 = vsyncpa [#allocation3], 1 }
 0x125   :  { %485 = vsyncpa [#allocation3 + $0x1], 1 }
 0x126   :  { %486 = vsyncpa [#allocation4], 1 }
 0x127   :  { %488 = vsyncpa [#allocation4 + $0x1], 1 }

</bundles_post_ra>
